<compile_context>
chip_gen: v6e
topology: v6e:2x2x1
jax: 0.10.0
libtpu: 0.0.40
codegen_flags: <defaults>
</compile_context>

<pallas_src>
import functools

import jax
import jax.numpy as jnp
from jax.experimental import pallas as pl
from jax.experimental.pallas import tpu as pltpu


def _fcn_head_kernel(x_ref, w1_ref, b1_ref, w2_ref, b2_ref, o_ref):
    # x_ref:  (Cin,  tp)   pixels-on-lane tile of one image
    # w1_ref: (Cmid, Cin)  conv_1 weight (BN scale folded in)
    # b1_ref: (Cmid, 1)    conv_1 bias   (BN folded in)
    # w2_ref: (NC,   Cmid) classifier weight
    # b2_ref: (NC,   1)    classifier bias
    # o_ref:  (NC,   tp)   logits tile (lane-dense store)
    x = x_ref[...]
    h = jnp.dot(w1_ref[...], x, preferred_element_type=jnp.float32)
    h = jnp.maximum(h + b1_ref[...], 0.0)            # bias + ReLU (BN pre-folded)
    logit = jnp.dot(w2_ref[...], h, preferred_element_type=jnp.float32)
    o_ref[...] = (logit + b2_ref[...]).astype(o_ref.dtype)


def _pick_pixel_tile(hw, n, target=2048):
    """Pick a lane-dense pixel tile.

    - multiple of 128 (unmasked vector stores), capped at `target`
    - falls back to the full row (H*W) when H*W is small or not 128-aligned
      (full-extent block dims are always legal)
    - if batch == 1, keep at least 2 grid steps so v7x's two TensorCores both
      get work via the 'parallel' grid axes.
    """
    if hw < 256 or hw % 128 != 0:
        return hw
    tp = (min(target, hw) // 128) * 128
    if n == 1 and tp == hw:
        tp = max(128, ((hw // 2) // 128) * 128)
    return tp


@functools.partial(jax.jit, static_argnames=("tp_target",))
def fcn_head_forward(x_nchw, params, *, tp_target=2048):
    """x_nchw: (N, Cin, H, W) float32 -> logits (N, num_classes, H, W)."""
    w1 = params["w1"]                # (Cmid, Cin)
    b1 = params["b1"]                # (Cmid, 1)
    bn_scale = params["bn_scale"]    # (Cmid, 1)
    bn_shift = params["bn_shift"]    # (Cmid, 1)
    w2 = params["w2"]                # (NC, Cmid)
    b2 = params["b2"]                # (NC, 1)

    # Fold eval-mode BatchNorm into conv_1 (pure param algebra, done once).
    w1f = w1 * bn_scale                      # (Cmid, Cin)
    b1f = b1 * bn_scale + bn_shift           # (Cmid, 1)

    n, cin, h, w = x_nchw.shape
    cmid = w1.shape[0]
    nc = w2.shape[0]
    hw = h * w

    # NCHW -> (N, Cin, H*W): a contiguous reshape, no transpose / HBM pass.
    x3 = x_nchw.reshape(n, cin, hw)

    tp = _pick_pixel_tile(hw, n, tp_target)
    grid = (n, pl.cdiv(hw, tp))              # non-divisible tails are masked

    out = pl.pallas_call(
        _fcn_head_kernel,
        out_shape=jax.ShapeDtypeStruct((n, nc, hw), jnp.float32),
        grid_spec=pltpu.PrefetchScalarGridSpec(
            num_scalar_prefetch=0,
            grid=grid,
            in_specs=[
                # batch dim squeezed out of the kernel view
                pl.BlockSpec((None, cin, tp), lambda b, i: (b, 0, i)),
                pl.BlockSpec((cmid, cin), lambda b, i: (0, 0)),
                pl.BlockSpec((cmid, 1), lambda b, i: (0, 0)),
                pl.BlockSpec((nc, cmid), lambda b, i: (0, 0)),
                pl.BlockSpec((nc, 1), lambda b, i: (0, 0)),
            ],
            out_specs=pl.BlockSpec((None, nc, tp), lambda b, i: (b, 0, i)),
        ),
        compiler_params=pltpu.CompilerParams(
            dimension_semantics=("parallel", "parallel")),
    )(x3, w1f, b1f, w2, b2)

    # (N, NC, H*W) -> (N, NC, H, W): free reshape, already NCHW-ordered.
    return out.reshape(n, nc, h, w)


def init_params(key, in_channels, channels, num_classes, eps=1e-5):
    """Deterministic synthetic parameters matching FCNHead.__init__ shapes
    (conv weights stored output-major like PyTorch (out, in))."""
    ks = jax.random.split(key, 8)
    # conv_1: Conv2d(in_channels, channels, k=1, bias=True)
    w1 = jax.random.normal(ks[0], (channels, in_channels), jnp.float32) * 0.05
    b1 = jax.random.normal(ks[1], (channels, 1), jnp.float32) * 0.05
    # BatchNorm2d(channels) in eval mode, folded to scale/shift
    gamma = 1.0 + 0.1 * jax.random.normal(ks[2], (channels, 1), jnp.float32)
    beta = 0.1 * jax.random.normal(ks[3], (channels, 1), jnp.float32)
    running_mean = 0.1 * jax.random.normal(ks[4], (channels, 1), jnp.float32)
    running_var = 0.5 + jnp.abs(jax.random.normal(ks[5], (channels, 1),
                                                  jnp.float32))
    bn_scale = gamma / jnp.sqrt(running_var + eps)
    bn_shift = beta - running_mean * bn_scale
    # cls: Conv2d(channels, num_classes, k=1, bias=True)
    w2 = jax.random.normal(ks[6], (num_classes, channels), jnp.float32) * 0.05
    b2 = jax.random.normal(ks[7], (num_classes, 1), jnp.float32) * 0.05
    return dict(w1=w1, b1=b1, bn_scale=bn_scale, bn_shift=bn_shift,
                w2=w2, b2=b2)


def reference_forward(x_nchw, params):
    """Pure-JAX reference with BN applied unfused (PyTorch op order)."""
    n, cin, h, w = x_nchw.shape
    x = x_nchw.reshape(n, cin, h * w)
    hmid = jnp.einsum("oc,ncp->nop", params["w1"], x) + params["b1"][None]
    hmid = hmid * params["bn_scale"][None] + params["bn_shift"][None]
    hmid = jnp.maximum(hmid, 0.0)
    logit = jnp.einsum("oc,ncp->nop", params["w2"], hmid) + params["b2"][None]
    return logit.reshape(n, -1, h, w)


if __name__ == "__main__":
    # Small synthetic config: num_classes=10, backbone_channels=(32,),
    # channels=None -> channels = 32.
    num_classes = 10
    in_channels = 32
    channels = in_channels
    N, H, W = 2, 16, 16              # H*W = 256 -> one lane-dense pixel tile

    key = jax.random.PRNGKey(0)
    kx, kp = jax.random.split(key)
    x = jax.random.normal(kx, (N, in_channels, H, W), jnp.float32)
    params = init_params(kp, in_channels, channels, num_classes)

    # forward(feat_list) uses feat_list[backbone_indices[0]] == feat_list[-1]
    feat_list = [x]
    logit_list = [fcn_head_forward(feat_list[-1], params)]
    logit = jax.block_until_ready(logit_list[0])

    ref = reference_forward(x, params)
    assert logit.shape == (N, num_classes, H, W)
    assert jnp.allclose(logit, ref, atol=1e-4, rtol=1e-4), "mismatch vs reference"
    print("KERNEL_OK")
</pallas_src>

<mosaic_0001>
module attributes {stable_mosaic.version = 11 : i64} {
  func.func @_fcn_head_kernel(%arg0: i32, %arg1: i32, %arg2: memref<1x32x256xf32, #tpu.memory_space<vmem>>, %arg3: memref<32x32xf32, #tpu.memory_space<vmem>>, %arg4: memref<32x1xf32, #tpu.memory_space<vmem>>, %arg5: memref<10x32xf32, #tpu.memory_space<vmem>>, %arg6: memref<10x1xf32, #tpu.memory_space<vmem>>, %arg7: memref<1x10x256xf32, #tpu.memory_space<vmem>>) attributes {dimension_semantics = [#tpu.dimension_semantics<parallel>, #tpu.dimension_semantics<parallel>], iteration_bounds = array<i64: 2, 1>, scalar_prefetch = 0 : i64, scratch_operands = 0 : i64, tpu.core_type = #tpu.core_type<tc>, window_params = [{transform_indices = @transform_0, window_bounds = array<i64: 1, 32, 256>}, {pipeline_mode = #tpu.pipeline_mode<synchronous>, transform_indices = @transform_1, window_bounds = array<i64: 32, 32>}, {pipeline_mode = #tpu.pipeline_mode<synchronous>, transform_indices = @transform_2, window_bounds = array<i64: 32, 1>}, {pipeline_mode = #tpu.pipeline_mode<synchronous>, transform_indices = @transform_3, window_bounds = array<i64: 10, 32>}, {pipeline_mode = #tpu.pipeline_mode<synchronous>, transform_indices = @transform_4, window_bounds = array<i64: 10, 1>}, {transform_indices = @transform_5, window_bounds = array<i64: 1, 10, 256>}]} {
    %c0 = arith.constant 0 : index
    %c0_0 = arith.constant 0 : index
    %c0_1 = arith.constant 0 : index
    %0 = vector.load %arg2[%c0, %c0_0, %c0_1] : memref<1x32x256xf32, #tpu.memory_space<vmem>>, vector<1x32x256xf32>
    %1 = vector.shape_cast %0 : vector<1x32x256xf32> to vector<32x256xf32>
    %c0_2 = arith.constant 0 : index
    %c0_3 = arith.constant 0 : index
    %2 = vector.load %arg3[%c0_2, %c0_3] : memref<32x32xf32, #tpu.memory_space<vmem>>, vector<32x32xf32>
    %cst = arith.constant dense<0.000000e+00> : vector<32x256xf32>
    %3 = tpu.matmul %2, %1, %cst {dimension_numbers = #tpu.dot_dimension_numbers<[1], [0], [0], [1], [0, 0, 1, 1], [], []>} : vector<32x32xf32>, vector<32x256xf32>, vector<32x256xf32> -> vector<32x256xf32>
    %c0_4 = arith.constant 0 : index
    %c0_5 = arith.constant 0 : index
    %4 = vector.load %arg4[%c0_4, %c0_5] : memref<32x1xf32, #tpu.memory_space<vmem>>, vector<32x1xf32>
    %5 = vector.broadcast %4 : vector<32x1xf32> to vector<32x256xf32>
    %6 = arith.addf %3, %5 : vector<32x256xf32>
    %cst_6 = arith.constant 0.000000e+00 : f32
    %7 = vector.broadcast %cst_6 : f32 to vector<32x256xf32>
    %8 = arith.maximumf %6, %7 : vector<32x256xf32>
    %c0_7 = arith.constant 0 : index
    %c0_8 = arith.constant 0 : index
    %9 = vector.load %arg5[%c0_7, %c0_8] : memref<10x32xf32, #tpu.memory_space<vmem>>, vector<10x32xf32>
    %cst_9 = arith.constant dense<0.000000e+00> : vector<10x256xf32>
    %10 = tpu.matmul %9, %8, %cst_9 {dimension_numbers = #tpu.dot_dimension_numbers<[1], [0], [0], [1], [0, 0, 1, 1], [], []>} : vector<10x32xf32>, vector<32x256xf32>, vector<10x256xf32> -> vector<10x256xf32>
    %c0_10 = arith.constant 0 : index
    %c0_11 = arith.constant 0 : index
    %11 = vector.load %arg6[%c0_10, %c0_11] : memref<10x1xf32, #tpu.memory_space<vmem>>, vector<10x1xf32>
    %12 = vector.broadcast %11 : vector<10x1xf32> to vector<10x256xf32>
    %13 = arith.addf %10, %12 : vector<10x256xf32>
    %c0_12 = arith.constant 0 : index
    %c0_13 = arith.constant 0 : index
    %c0_14 = arith.constant 0 : index
    %14 = vector.load %arg7[%c0_12, %c0_13, %c0_14] : memref<1x10x256xf32, #tpu.memory_space<vmem>>, vector<1x10x256xf32>
    %15 = vector.shape_cast %14 : vector<1x10x256xf32> to vector<10x256xf32>
    %16 = vector.shape_cast %13 : vector<10x256xf32> to vector<1x10x256xf32>
    tpu.vector_store %arg7[%c0_12, %c0_13, %c0_14], %16 {strides = array<i32>} : memref<1x10x256xf32, #tpu.memory_space<vmem>>, vector<1x10x256xf32>,
    return
  }
  func.func @transform_0(%arg0: i32, %arg1: i32) -> (i32, i32, i32) {
    %c0_i32 = arith.constant 0 : i32
    %c0_i32_0 = arith.constant 0 : i32
    return %arg0, %c0_i32, %arg1 : i32, i32, i32
  }
  func.func @transform_1(%arg0: i32, %arg1: i32) -> (i32, i32) {
    %c0_i32 = arith.constant 0 : i32
    %c0_i32_0 = arith.constant 0 : i32
    %c0_i32_1 = arith.constant 0 : i32
    return %c0_i32, %c0_i32_0 : i32, i32
  }
  func.func @transform_2(%arg0: i32, %arg1: i32) -> (i32, i32) {
    %c0_i32 = arith.constant 0 : i32
    %c0_i32_0 = arith.constant 0 : i32
    %c0_i32_1 = arith.constant 0 : i32
    return %c0_i32, %c0_i32_0 : i32, i32
  }
  func.func @transform_3(%arg0: i32, %arg1: i32) -> (i32, i32) {
    %c0_i32 = arith.constant 0 : i32
    %c0_i32_0 = arith.constant 0 : i32
    %c0_i32_1 = arith.constant 0 : i32
    return %c0_i32, %c0_i32_0 : i32, i32
  }
  func.func @transform_4(%arg0: i32, %arg1: i32) -> (i32, i32) {
    %c0_i32 = arith.constant 0 : i32
    %c0_i32_0 = arith.constant 0 : i32
    %c0_i32_1 = arith.constant 0 : i32
    return %c0_i32, %c0_i32_0 : i32, i32
  }
  func.func @transform_5(%arg0: i32, %arg1: i32) -> (i32, i32, i32) {
    %c0_i32 = arith.constant 0 : i32
    %c0_i32_0 = arith.constant 0 : i32
    return %arg0, %c0_i32, %arg1 : i32, i32, i32
  }
}

</mosaic_0001>

<bundles_post_ra>
// kernel: mul.9
= control target key start
LH: loop header
LB: loop body
LE: loop exit
PB: predicated region body
PF: predicated region fallthrough
CT: control target
= control target key end

     0   :  { %s34_s0 = inlined_call_operand.vmem [shape: f32[32,1], index: 0, kind: input, shape index: {}]   ;;  %s35_s1 = inlined_call_operand.vmem [shape: f32[32,1], index: 1, kind: input, shape index: {}]   ;;  %s36_s2 = inlined_call_operand.vmem [shape: f32[32,1], index: 2, kind: output, shape index: {}]  }
   0x1   :  { %v3_v0 = vld [vmem:[%s34_s0] sm:$0x1] }
   0x2   :  { %v4_v1 = vld [vmem:[%s35_s1] sm:$0x1] }
   0x3   :  { %v7_v2 = vmul.f32 %v4_v1, %v3_v0 }
   0x5   :  { %9 = vst [vmem:[%s36_s2] sm:$0x1] %v7_v2 }

// kernel: fcn_head_forward.1
= control target key start
LH: loop header
LB: loop body
LE: loop exit
PB: predicated region body
PF: predicated region fallthrough
CT: control target
= control target key end

     0   :  { %s701_s18 = smov 0   ;;  %s703_s19 = smov 0   ;;  %s786_s0 = inlined_call_operand.vmem [shape: f32[2,32,256], index: 0, kind: input, shape index: {}]   ;;  %s787_s1 = inlined_call_operand.vmem [shape: f32[32,32], index: 1, kind: input, shape index: {}]   ;;  %s788_s2 = inlined_call_operand.vmem [shape: f32[32,1], index: 2, kind: input, shape index: {}]   ;;  %s789_s3 = inlined_call_operand.vmem [shape: f32[10,32], index: 3, kind: input, shape index: {}]   ;;  %s790_s4 = inlined_call_operand.vmem [shape: f32[10,1], index: 4, kind: input, shape index: {}]   ;;  %s791_s5 = inlined_call_operand.vmem [shape: f32[2,10,256], index: 5, kind: output, shape index: {}]  }
   0x1   :  { %s705_s20 = smov 0  }
   0x2 LB: > { %s27_s21 = sadd.s32 1, %s663_s19  ;;  %p602_p0 = scmp.ge.s32.totalorder %s667_s20, 1  ;;  %s667_s20 = sphi %s705_s20, %s15_s20   ;;  %s663_s19 = sphi %s703_s19, %s793_s19   ;;  %s659_s18 = sphi %s701_s18, %s792_s18  }
   0x3   : > { %p29_p1 = scmp.ge.s32.totalorder %s27_s21, 2  ;;  %p208_p2 = scmp.lt.s32.totalorder %s667_s20, 3 }
   0x5   : > { %s795_s21 = smov (%p29_p1, %s27_s21), 0  ;;  %p209_p3 = pnand %p602_p0, %p208_p2 }
   0x6   : > { %p245_p4 = scmp.lt.s32.totalorder (!%p209_p3), %s659_s18, 1 }
   0x7   : > { %212 = sbr.rel (%p209_p3) target bundleno = 447 (0x1bf), region = 40 }
   0xc   : > { %v669_v0 = vmov 0.0   ;;  %v277_v1 = vld [vmem:[%s788_s2 + $0x8] sm:$0xff]  ;;  %s797_s18 = smov (!%p245_p4, %s659_s18), 1  ;;  %v670_v2 = vmov 0   ;;  %v279_v3 = vld [vmem:[%s788_s2 + $0x18] sm:$0xff]  ;;  %v276_v4 = vld [vmem:[%s788_s2] sm:$0xff] }
   0xd   : > { %377 = vmatprep.mubr.f32.mxu0 %v669_v0  ;;  %494 = vmatprep.mubr.f32.mxu1 %v669_v0  ;;  %s615_s26 = sshll.u32 %s797_s18, 6  ;;  %v278_v5 = vld [vmem:[%s788_s2 + $0x10] sm:$0xff]  ;;  %v413_v11 = vld [vmem:[%s790_s4 + $0x8] sm:$0x3]  ;;  %v412_v13 = vld [vmem:[%s790_s4] sm:$0xff]  ;;  %vm300_vm0 = vcmask 261120  }
   0xe   : > { %644 = vset.pattern.permute.xlu1 %v670_v2  ;;  %643 = vset.pattern.permute.xlu0 %v670_v2  ;;  %s252_s6 = scalar_lea.vmem %s786_s0, %s615_s26  ;;  %v272_v16 = vld [vmem:[%s787_s1] sm:$0xff]  ;;  %v273_v17 = vld [vmem:[%s787_s1 + $0x8] sm:$0xff]  ;;  %v274_v18 = vld [vmem:[%s787_s1 + $0x10] sm:$0xff]  ;;  %s616_s29 = sshll.u32 %s797_s18, 5 }
   0xf   : > { %287 = vperm.xlu1 %644, %v277_v1   ;;  %297 = vperm.xlu0 %643, %v279_v3   ;;  %v271_v6 = vld [vmem:[%s252_s6 + $0x38] sm:$0xff]  ;;  %v270_v7 = vld [vmem:[%s252_s6 + $0x30] sm:$0xff]  ;;  %v269_v8 = vld [vmem:[%s252_s6 + $0x28] sm:$0xff]  ;;  %s262_s7 = scalar_lea.vmem %s791_s5, %s616_s29 }
  0x10   : > { %337 = vmatprep.subr.mxu0 %v271_v6  ;;  %v268_v9 = vld [vmem:[%s252_s6 + $0x20] sm:$0xff]  ;;  %v267_v10 = vld [vmem:[%s252_s6 + $0x18] sm:$0xff]  ;;  %v266_v12 = vld [vmem:[%s252_s6 + $0x10] sm:$0xff] }
  0x11   : > { %338 = vmatpush1.msra.mxu0 %v270_v7  ;;  %v265_v14 = vld [vmem:[%s252_s6 + $0x8] sm:$0xff]  ;;  %v264_v15 = vld [vmem:[%s252_s6] sm:$0xff]  ;;  %v275_v19 = vld [vmem:[%s787_s1 + $0x18] sm:$0xff] }
  0x12   : > { %339 = vmatprep.subr.mxu0 %v269_v8  ;;  %v410_v48 = vld [vmem:[%s789_s3] sm:$0xff]  ;;  %v411_v49 = vld [vmem:[%s789_s3 + $0x8] sm:$0x3] }
  0x13   : > { %282 = vperm.xlu1 %644, %v276_v4   ;;  %292 = vperm.xlu0 %643, %v278_v5  }
  0x14   : > { %340 = vmatpush1.msra.mxu0 %v268_v9 }
  0x15   : > { %341 = vmatprep.subr.mxu0 %v267_v10 }
  0x16   : > { %342 = vmatpush1.msra.mxu0 %v266_v12 }
  0x17   : > { %421 = vperm.xlu1 %644, %v413_v11   ;;  %416 = vperm.xlu0 %643, %v412_v13  }
  0x18   : > { %343 = vmatprep.subr.mxu0 %v265_v14 }
  0x19   : > { %344 = vmatpush1.msra.mxu0 %v264_v15 }
  0x1a   : > { %607 = vmatmul.mubr.msk.f32.vlgmr.msra.gmra.mxu0 %vm300_vm0, %v272_v16 }
  0x1b   : > { %383 = vmatprep.mubr.f32.mxu0 %v669_v0 }
  0x1e   : > { %608 = vmatmul.mubr.msk.f32.gmra.mxu0 %vm300_vm0, %v273_v17 }
  0x1f   : > { %389 = vmatprep.mubr.f32.mxu0 %v669_v0 }
  0x22   : > { %609 = vmatmul.mubr.msk.f32.gmra.mxu0 %vm300_vm0, %v274_v18 }
  0x23   : > { %395 = vmatprep.mubr.f32.mxu0 %v669_v0 }
  0x26   : > { %610 = vmatmul.mubr.msk.f32.gmra.mxu0 %vm300_vm0, %v275_v19 }
  0x8a   : > { %v298_v24 = vpop.permute.xlu0 %297  ;;  %v288_v27 = vpop.permute.xlu1 %287 }
  0x8e   : > { %v293_v29 = vpop.permute.xlu0 %292  ;;  %v283_v35 = vpop.permute.xlu1 %282 }
  0x92   : > { %v417_v50 = vpop.permute.xlu0 %416  ;;  %v422_v55 = vpop.permute.xlu1 %421 }
  0xda   : > { %v379_v20 = vpop.f32.mrf.mxu0 }
  0xdb   : > { %v380_v42 = vadd.f32 %v379_v20, %v283_v35 }
  0xdc   : > { %v381_v21 = vpop.f32.mrf.mxu0 }
  0xdd   : > { %v382_v40 = vadd.f32 %v381_v21, %v283_v35  ;;  %v402_v47 = vmax.f32 %v380_v42, 0.0 }
  0xde   : > { %v385_v22 = vpop.f32.mrf.mxu0 }
  0xdf   : > { %v386_v38 = vadd.f32 %v385_v22, %v288_v27  ;;  %v403_v46 = vmax.f32 %v382_v40, 0.0 }
  0xe0   : > { %v387_v23 = vpop.f32.mrf.mxu0 }
  0xe1   : > { %v388_v36 = vadd.f32 %v387_v23, %v288_v27  ;;  %v404_v45 = vmax.f32 %v386_v38, 0.0 }
  0xe2   : > { %v391_v25 = vpop.f32.mrf.mxu0 }
  0xe3   : > { %v392_v34 = vadd.f32 %v391_v25, %v293_v29  ;;  %v405_v44 = vmax.f32 %v388_v36, 0.0 }
  0xe4   : > { %v393_v26 = vpop.f32.mrf.mxu0 }
  0xe5   : > { %v394_v32 = vadd.f32 %v393_v26, %v293_v29  ;;  %v406_v43 = vmax.f32 %v392_v34, 0.0 }
  0xe6   : > { %v397_v28 = vpop.f32.mrf.mxu0 }
  0xe7   : > { %v398_v30 = vadd.f32 %v397_v28, %v298_v24  ;;  %v407_v41 = vmax.f32 %v394_v32, 0.0 }
  0xe8   : > { %v399_v31 = vpop.f32.mrf.mxu0 }
  0xe9   : > { %v400_v33 = vadd.f32 %v399_v31, %v298_v24  ;;  %v408_v39 = vmax.f32 %v398_v30, 0.0 }
  0xeb   : > { %v409_v37 = vmax.f32 %v400_v33, 0.0 }
  0xed   : > { %454 = vmatprep.subr.mxu1 %v409_v37 }
  0xee   : > { %455 = vmatpush1.msra.mxu1 %v408_v39 }
  0xef   : > { %456 = vmatprep.subr.mxu1 %v407_v41 }
  0xf0   : > { %457 = vmatpush1.msra.mxu1 %v406_v43 }
  0xf1   : > { %458 = vmatprep.subr.mxu1 %v405_v44 }
  0xf2   : > { %459 = vmatpush1.msra.mxu1 %v404_v45 }
  0xf3   : > { %460 = vmatprep.subr.mxu1 %v403_v46 }
  0xf4   : > { %461 = vmatpush1.msra.mxu1 %v402_v47 }
  0xf5   : > { %611 = vmatmul.mubr.msk.f32.vlgmr.msra.gmra.mxu1 %vm300_vm0, %v410_v48 }
  0xf6   : > { %500 = vmatprep.mubr.f32.mxu1 %v669_v0 }
  0xf9   : > { %612 = vmatmul.mubr.msk.f32.gmra.mxu1 %vm300_vm0, %v411_v49 }
 0x1b5   : > { %v496_v51 = vpop.f32.mrf.mxu1 }
 0x1b6   : > { %v497_v52 = vadd.f32 %v496_v51, %v417_v50 }
 0x1b7   : > { %v498_v53 = vpop.f32.mrf.mxu1 }
 0x1b8   : > { %507 = vst [vmem:[%s262_s7] sm:$0xff] %v497_v52  ;;  %v499_v54 = vadd.f32 %v498_v53, %v417_v50 }
 0x1b9   : > { %v502_v56 = vpop.f32.mrf.mxu1 }
 0x1ba   : > { %508 = vst [vmem:[%s262_s7 + $0x8] sm:$0xff] %v499_v54  ;;  %v503_v57 = vadd.f32 %v502_v56, %v422_v55 }
 0x1bb   : > { %v504_v58 = vpop.f32.mrf.mxu1 }
 0x1bc   : > { %509 = vst [vmem:[%s262_s7 + $0x10] sm:$0x3] %v503_v57  ;;  %v505_v59 = vadd.f32 %v504_v58, %v422_v55 }
 0x1be   : > { %510 = vst [vmem:[%s262_s7 + $0x18] sm:$0x3] %v505_v59 }
 0x1bf PF: > { %s15_s20 = sadd.s32 1, %s667_s20   ;;  %s792_s18 = smov %s663_s19 }
 0x1c0   : > { %p12_p5 = scmp.ge.s32.totalorder %s15_s20, 4   ;;  %s793_s19 = smov %s795_s21 }
 0x1c2   :  { %14 = sbr.rel (!%p12_p5) target bundleno = 2 (0x2), region = 70 }

</bundles_post_ra>
